<compile_context>
chip_gen: v5e
topology: v5e:2x2
jax: 0.10.0
libtpu: 0.0.40
codegen_flags: <defaults>
</compile_context>

<pallas_src>
import jax
import jax.numpy as jnp
from jax import lax
from jax.experimental import pallas as pl
from jax.experimental.pallas import tpu as pltpu


def _round_up(x, m):
    return (x + m - 1) // m * m


def edge_layer_kernel(emb_ref, cnt_ref, rel_ref, relw_ref, out_ref):
    emb = emb_ref[...]                              # (TM, Dp) f32 dst-node embeddings
    cnt = cnt_ref[...].astype(jnp.float32)          # (TM, Rp) int8 -> f32 relation counts
    rel = rel_ref[...]                              # (Rp, Dp) f32 relation embeddings (resident)
    rel_w = relw_ref[...]                           # (Rp, Dp) f32 rel_emb @ neigh_w (resident)

    # e_dot_v: s[v, r] = <ent_emb[v], rel_emb[r]>.  dot_general contracts the
    # feature dim directly, so no explicit transpose of rel_emb is needed.
    scores = lax.dot_general(emb, rel, (((1,), (1,)), ((), ())),
                             preferred_element_type=jnp.float32)     # (TM, Rp)

    # edge_softmax over incoming edges of each destination row, weighted by the
    # edge multiplicity cnt.  Mask / max / exp math kept in f32 (-1e30 sentinel).
    has_edge = cnt > 0.0
    masked = jnp.where(has_edge, scores, jnp.float32(-1e30))
    row_max = jnp.max(masked, axis=-1, keepdims=True)                # (TM, 1)
    # cnt == 0 (absent relation / padding) zeroes the term, so no second select;
    # zero-in-degree rows give denom == 0 and end up as tanh(0), matching DGL.
    w = cnt * jnp.exp(masked - row_max)                              # (TM, Rp)
    denom = jnp.sum(w, axis=-1, keepdims=True)                       # (TM, 1)
    safe_denom = jnp.where(denom > 0.0, denom, 1.0)

    # Deferred normalization: aggregate un-normalized on the MXU against the
    # pre-projected relation table, then scale the small (TM, Dp) result.
    unnorm = jnp.dot(w, rel_w, preferred_element_type=jnp.float32)   # (TM, Dp)
    out_ref[...] = jnp.tanh(unnorm * (1.0 / safe_denom))
    # TODO(synk): optional BatchNorm1d (args.bn=True) branch not implemented; config uses bn=False.
    # TODO(synk): bf16 MXU inputs (f32 accumulate) would double MXU throughput on v6e/v7x.


def edge_layer_forward(ent_emb, rel_counts, rel_emb, neigh_w, *, tile_m=256):
    """ent_emb (N, D) f32, rel_counts (N, R) int (fits int8), rel_emb (R, D) f32,
    neigh_w (D, D) f32  ->  (N, D) f32."""
    N, D = ent_emb.shape
    R, D2 = rel_emb.shape
    assert D2 == D and neigh_w.shape == (D, D) and rel_counts.shape == (N, R)

    Dp = _round_up(D, 128)                   # lane-dense feature dim
    Rp = _round_up(R, 128)                   # lane-dense relation dim
    TM = _round_up(min(tile_m, _round_up(N, 32)), 32)   # int8 packs 32 rows / tile
    Np = _round_up(N, TM)

    emb_p = jnp.zeros((Np, Dp), jnp.float32).at[:N, :D].set(ent_emb.astype(jnp.float32))
    # NOTE: counts must fit int8 (in-degree per (dst, rel) < 128); use int16 otherwise.
    cnt_p = jnp.zeros((Np, Rp), jnp.int8).at[:N, :R].set(rel_counts.astype(jnp.int8))
    rel_p = jnp.zeros((Rp, Dp), jnp.float32).at[:R, :D].set(rel_emb.astype(jnp.float32))
    w_p = jnp.zeros((Dp, Dp), jnp.float32).at[:D, :D].set(neigh_w.astype(jnp.float32))
    # Fold neigh_w into the relation table once (tiny R x D x D matmul), so the
    # kernel does only the two large matmuls per row tile.
    rel_w_p = rel_p @ w_p                    # (Rp, Dp)

    grid = (Np // TM,)
    cost = pl.CostEstimate(
        flops=int(4.0 * Np * Rp * Dp),
        transcendentals=int(Np * Rp + Np * Dp),
        bytes_accessed=int(Np * Rp * 1 + 2 * Np * Dp * 4 + 2 * Rp * Dp * 4),
    )

    out_p = pl.pallas_call(
        edge_layer_kernel,
        out_shape=jax.ShapeDtypeStruct((Np, Dp), jnp.float32),
        grid_spec=pltpu.PrefetchScalarGridSpec(
            num_scalar_prefetch=0,
            grid=grid,
            in_specs=[
                pl.BlockSpec((TM, Dp), lambda i: (i, 0)),   # dst-node embeddings (tiled)
                pl.BlockSpec((TM, Rp), lambda i: (i, 0)),   # int8 relation counts (tiled)
                pl.BlockSpec((Rp, Dp), lambda i: (0, 0)),   # rel_emb (VMEM-resident)
                pl.BlockSpec((Rp, Dp), lambda i: (0, 0)),   # rel_emb @ neigh_w (resident)
            ],
            out_specs=pl.BlockSpec((TM, Dp), lambda i: (i, 0)),
        ),
        compiler_params=pltpu.CompilerParams(
            dimension_semantics=("parallel",),          # rows independent; v7x 2-TC split
            vmem_limit_bytes=32 * 1024 * 1024,          # safe on v5e/v6e/v7x
        ),
        cost_estimate=cost,
    )(emb_p, cnt_p, rel_p, rel_w_p)
    return out_p[:N, :D]


def edge_layer_reference(ent_emb, edge_dst, edge_rel, rel_emb, neigh_w):
    """Pure-JAX per-edge reference matching the DGL module exactly."""
    N = ent_emb.shape[0]
    e_emb = rel_emb[edge_rel]                                   # (E, D)  rel_emb[rel_id]
    score = jnp.sum(e_emb * ent_emb[edge_dst], axis=-1)         # (E,)    e_dot_v
    seg_max = jax.ops.segment_max(score, edge_dst, num_segments=N)
    seg_max = jnp.where(jnp.isfinite(seg_max), seg_max, 0.0)
    ex = jnp.exp(score - seg_max[edge_dst])
    denom = jax.ops.segment_sum(ex, edge_dst, num_segments=N)
    alpha = ex / jnp.where(denom > 0.0, denom, 1.0)[edge_dst]   # edge_softmax
    neigh = jax.ops.segment_sum(e_emb * alpha[:, None], edge_dst, num_segments=N)
    return jnp.tanh(neigh @ neigh_w)


if __name__ == "__main__":
    # Small config consistent with the module: num_ent=64, num_rel=12 (-> 24 rows
    # of rel_emb incl. inverse relations), emb_dim=32, bn=False, 256 edges.
    N, D, n_rel, E = 64, 32, 12, 256
    R = 2 * n_rel
    key = jax.random.PRNGKey(0)
    k_emb, k_rel, k_w, k_dst, k_rid = jax.random.split(key, 5)

    ent_emb = jax.random.normal(k_emb, (N, D), dtype=jnp.float32)
    rel_emb = jax.random.normal(k_rel, (R, D), dtype=jnp.float32)
    neigh_w = (jax.random.normal(k_w, (D, D), dtype=jnp.float32)
               * (1.0 / jnp.sqrt(jnp.float32(D))))

    # Random multigraph: E edges, each with a destination node and a relation id.
    # (Source nodes are irrelevant to EdgeLayer: e_dot_v and copy_e ignore them.)
    edge_dst = jax.random.randint(k_dst, (E,), 0, N)
    edge_rel = jax.random.randint(k_rid, (E,), 0, R)

    # Dense per-destination relation-count representation consumed by the kernel.
    rel_counts = jnp.zeros((N, R), jnp.int32).at[edge_dst, edge_rel].add(1)

    out = edge_layer_forward(ent_emb, rel_counts, rel_emb, neigh_w, tile_m=32)
    out = jax.block_until_ready(out)

    ref = edge_layer_reference(ent_emb, edge_dst, edge_rel, rel_emb, neigh_w)
    assert out.shape == (N, D)
    assert jnp.allclose(out, ref, atol=1e-4, rtol=1e-4), "mismatch vs per-edge reference"

    print("KERNEL_OK")
</pallas_src>

<mosaic_0001>
module attributes {stable_mosaic.version = 11 : i64} {
  func.func @edge_layer_kernel(%arg0: i32, %arg1: memref<32x128xf32, #tpu.memory_space<vmem>>, %arg2: memref<32x128xi8, #tpu.memory_space<vmem>>, %arg3: memref<128x128xf32, #tpu.memory_space<vmem>>, %arg4: memref<128x128xf32, #tpu.memory_space<vmem>>, %arg5: memref<32x128xf32, #tpu.memory_space<vmem>>) attributes {dimension_semantics = [#tpu.dimension_semantics<parallel>], iteration_bounds = array<i64: 2>, scalar_prefetch = 0 : i64, scratch_operands = 0 : i64, tpu.core_type = #tpu.core_type<tc>, window_params = [{transform_indices = @transform_0, window_bounds = array<i64: 32, 128>}, {transform_indices = @transform_1, window_bounds = array<i64: 32, 128>}, {pipeline_mode = #tpu.pipeline_mode<synchronous>, transform_indices = @transform_2, window_bounds = array<i64: 128, 128>}, {pipeline_mode = #tpu.pipeline_mode<synchronous>, transform_indices = @transform_3, window_bounds = array<i64: 128, 128>}, {transform_indices = @transform_4, window_bounds = array<i64: 32, 128>}]} {
    %c0 = arith.constant 0 : index
    %c0_0 = arith.constant 0 : index
    %0 = vector.load %arg1[%c0, %c0_0] : memref<32x128xf32, #tpu.memory_space<vmem>>, vector<32x128xf32>
    %c0_1 = arith.constant 0 : index
    %c0_2 = arith.constant 0 : index
    %1 = vector.load %arg2[%c0_1, %c0_2] : memref<32x128xi8, #tpu.memory_space<vmem>>, vector<32x128xi8>
    %2 = arith.sitofp %1 : vector<32x128xi8> to vector<32x128xf32>
    %c0_3 = arith.constant 0 : index
    %c0_4 = arith.constant 0 : index
    %3 = vector.load %arg3[%c0_3, %c0_4] : memref<128x128xf32, #tpu.memory_space<vmem>>, vector<128x128xf32>
    %c0_5 = arith.constant 0 : index
    %c0_6 = arith.constant 0 : index
    %4 = vector.load %arg4[%c0_5, %c0_6] : memref<128x128xf32, #tpu.memory_space<vmem>>, vector<128x128xf32>
    %cst = arith.constant dense<0.000000e+00> : vector<32x128xf32>
    %5 = tpu.matmul %0, %3, %cst {dimension_numbers = #tpu.dot_dimension_numbers<[1], [1], [0], [0], [0, 0, 1, 0], [], []>} : vector<32x128xf32>, vector<128x128xf32>, vector<32x128xf32> -> vector<32x128xf32>
    %cst_7 = arith.constant 0.000000e+00 : f32
    %6 = vector.broadcast %cst_7 : f32 to vector<32x128xf32>
    %7 = arith.cmpf ogt, %2, %6 : vector<32x128xf32>
    %cst_8 = arith.constant -1.000000e+30 : f32
    %8 = vector.broadcast %cst_8 : f32 to vector<32x128xf32>
    %9 = arith.select %7, %5, %8 : vector<32x128xi1>, vector<32x128xf32>
    %cst_9 = arith.constant dense<0xFF800000> : vector<32xf32>
    %10 = vector.multi_reduction <maximumf>, %9, %cst_9 [1] : vector<32x128xf32> to vector<32xf32>
    %11 = vector.shape_cast %10 : vector<32xf32> to vector<32x1xf32>
    %12 = vector.broadcast %11 : vector<32x1xf32> to vector<32x128xf32>
    %13 = arith.subf %9, %12 : vector<32x128xf32>
    %14 = math.exp %13 : vector<32x128xf32>
    %15 = arith.mulf %2, %14 : vector<32x128xf32>
    %cst_10 = arith.constant dense<0.000000e+00> : vector<32xf32>
    %16 = vector.multi_reduction <add>, %15, %cst_10 [1] : vector<32x128xf32> to vector<32xf32>
    %17 = vector.shape_cast %16 : vector<32xf32> to vector<32x1xf32>
    %cst_11 = arith.constant 0.000000e+00 : f32
    %18 = vector.broadcast %cst_11 : f32 to vector<32x1xf32>
    %19 = arith.cmpf ogt, %17, %18 : vector<32x1xf32>
    %cst_12 = arith.constant 1.000000e+00 : f32
    %20 = vector.broadcast %cst_12 : f32 to vector<32x1xf32>
    %21 = arith.select %19, %17, %20 : vector<32x1xi1>, vector<32x1xf32>
    %cst_13 = arith.constant dense<0.000000e+00> : vector<32x128xf32>
    %22 = tpu.matmul %15, %4, %cst_13 {dimension_numbers = #tpu.dot_dimension_numbers<[1], [0], [0], [1], [0, 0, 1, 1], [], []>} : vector<32x128xf32>, vector<128x128xf32>, vector<32x128xf32> -> vector<32x128xf32>
    %cst_14 = arith.constant 1.000000e+00 : f32
    %23 = vector.broadcast %cst_14 : f32 to vector<32x1xf32>
    %24 = arith.divf %23, %21 : vector<32x1xf32>
    %25 = vector.broadcast %24 : vector<32x1xf32> to vector<32x128xf32>
    %26 = arith.mulf %22, %25 : vector<32x128xf32>
    %27 = math.tanh %26 : vector<32x128xf32>
    %c0_15 = arith.constant 0 : index
    %c0_16 = arith.constant 0 : index
    %28 = vector.load %arg5[%c0_15, %c0_16] : memref<32x128xf32, #tpu.memory_space<vmem>>, vector<32x128xf32>
    tpu.vector_store %arg5[%c0_15, %c0_16], %27 {strides = array<i32>} : memref<32x128xf32, #tpu.memory_space<vmem>>, vector<32x128xf32>,
    return
  }
  func.func @transform_0(%arg0: i32) -> (i32, i32) {
    %c0_i32 = arith.constant 0 : i32
    %c0_i32_0 = arith.constant 0 : i32
    return %arg0, %c0_i32 : i32, i32
  }
  func.func @transform_1(%arg0: i32) -> (i32, i32) {
    %c0_i32 = arith.constant 0 : i32
    %c0_i32_0 = arith.constant 0 : i32
    return %arg0, %c0_i32 : i32, i32
  }
  func.func @transform_2(%arg0: i32) -> (i32, i32) {
    %c0_i32 = arith.constant 0 : i32
    %c0_i32_0 = arith.constant 0 : i32
    %c0_i32_1 = arith.constant 0 : i32
    return %c0_i32, %c0_i32_0 : i32, i32
  }
  func.func @transform_3(%arg0: i32) -> (i32, i32) {
    %c0_i32 = arith.constant 0 : i32
    %c0_i32_0 = arith.constant 0 : i32
    %c0_i32_1 = arith.constant 0 : i32
    return %c0_i32, %c0_i32_0 : i32, i32
  }
  func.func @transform_4(%arg0: i32) -> (i32, i32) {
    %c0_i32 = arith.constant 0 : i32
    %c0_i32_0 = arith.constant 0 : i32
    return %arg0, %c0_i32 : i32, i32
  }
}

</mosaic_0001>

<bundles_post_ra>
// kernel: tpu_custom_call.1
= control target key start
LH: loop header
LB: loop body
LE: loop exit
PB: predicated region body
PF: predicated region fallthrough
CT: control target
= control target key end

     0   :  { %s1229_s0 = inlined_call_operand.hbm [shape: f32[64,128], index: 0, kind: input, shape index: {}]   ;;  %s1230_s1 = inlined_call_operand.hbm [shape: s8[64,128], index: 1, kind: input, shape index: {}]   ;;  %s1231_s2 = inlined_call_operand.hbm [shape: f32[128,128], index: 2, kind: input, shape index: {}]   ;;  %s1232_s3 = inlined_call_operand.hbm [shape: f32[128,128], index: 3, kind: input, shape index: {}]   ;;  %s1233_s4 = inlined_call_operand.hbm [shape: f32[64,128], index: 4, kind: output, shape index: {}]  }
   0x1   :  { %1236 = sst [smem:[#allocation17_spill]] %s1231_s2 }
   0x2   :  { %1237 = sst [smem:[#allocation18_spill]] %s1232_s3 }
   0x3   :  { %9 = vsyncpa [#allocation3], 0 }
   0x4   :  { %11 = vsyncpa [#allocation3 + $0x1], 0 }
   0x5   :  { %12 = vsyncpa [#allocation6], 0 }
   0x6   :  { %14 = vsyncpa [#allocation6 + $0x1], 0 }
   0x7   :  { %15 = vsyncpa [#allocation9], 0 }
   0x8   :  { %16 = vsyncpa [#allocation4], 0 }
   0x9   :  { %18 = vsyncpa [#allocation4 + $0x1], 0  ;;  %s1032_s15 = smov 0   ;;  %s1034_s16 = smov 0  }
   0xa   :  { %s1036_s17 = smov 0   ;;  %s1038_s18 = smov 0  }
   0xb LB: > { %s1053_s19 = sadd.s32 4294967295, %s999_s18   ;;  %s646_s20 = sadd.s32 4294967294, %s999_s18   ;;  %s999_s18 = sphi %s1038_s18, %s1253_s18   ;;  %s995_s17 = sphi %s1036_s17, %s1252_s17   ;;  %s991_s16 = sphi %s1034_s16, %s1251_s16   ;;  %s987_s15 = sphi %s1032_s15, %s1250_s15  }
   0xc   : > { %p44_p0 = scmp.ne.s32.totalorder %s991_s16, %s987_s15  ;;  %p45_p1 = scmp.eq.s32.totalorder %s1053_s19, 0 }
   0xd   : > { %p136_p2 = scmp.eq.s32.totalorder %s1053_s19, 1  ;;  %p142_p3 = scmp.eq.s32.totalorder %s646_s20, 1 }
   0xe   : > { %p1062_p4 = por %p45_p1, %p44_p0  ;;  %p647_p5 = scmp.ge.s32.totalorder %s999_s18, 1 }
   0xf   : > { %p1067_p6 = por %p142_p3, %p44_p0  ;;  %p149_p7 = scmp.lt.s32.totalorder %s999_s18, 3 }
  0x10   : > { %s1240_s2 = sld [smem:[#allocation17_spill]]  ;;  %s1001_s27 = smov [#allocation7]  }
  0x11   : > { %p1075_p8 = pnand %p647_p5, %p149_p7  ;;  %s162_s28 = sshll.u32 %s1001_s27, 4  ;;  %s163_s28 = int_to_ptr.vmem [resolvable:$true] %s162_s28 }
  0x12   : > { %s1242_s3 = sld [smem:[#allocation18_spill]]  ;;  %s1234_s6 = smov 128  }
  0x13   : > { %p715_p9 = pneg %p1075_p8  ;;  %s1235_s7 = smov 8  }
  0x14   : > { %s1004_s8 = smov [#allocation8]   ;;  %s1094_s10 = sadd.s32 1, %s999_s18  }
  0x15   : > { %p716_p10 = pnand %p715_p9, %p45_p1  ;;  %s176_s9 = sshll.u32 %s1004_s8, 4  ;;  %s177_s9 = int_to_ptr.vmem [resolvable:$true] %s176_s9 }
  0x16   : > { %s160_s25 = sshll.u32 %s1240_s2, 4  ;;  %s31_s11 = sadd.s32 1, %s995_s17  ;;  %s161_s25 = int_to_ptr.hbm [resolvable:$true] %s160_s25 }
  0x17   : > { %718 = dma.hbm_to_vmem [thread:$0]  (!%p716_p10), %s161_s25, 2048, %s163_s28, [#allocation6], %s1234_s6, %s1234_s6, %s1235_s7  }
  0x18   : > { %s174_s5 = sshll.u32 %s1242_s3, 4  ;;  %s28_s12 = ssub.s32 %s999_s18, %s1094_s10  ;;  %s175_s5 = int_to_ptr.hbm [resolvable:$true] %s174_s5 }
  0x19   : > { %721 = dma.hbm_to_vmem [thread:$0]  (!%p716_p10), %s175_s5, 2048, %s177_s9, [#allocation9], %s1234_s6, %s1234_s6, %s1235_s7  }
  0x1a   : > { %p38_p12 = scmp.ne.s32.totalorder %s995_s17, %s991_s16  ;;  %p29_p13 = scmp.eq.s32.totalorder %s28_s12, 0 }
  0x1b   : > { %p39_p0 = scmp.eq.s32.totalorder %s999_s18, 0  ;;  %p735_p5 = scmp.lt.s32.totalorder %s999_s18, 2 }
  0x1c   : > { %p1104_p3 = por %p136_p2, %p38_p12  ;;  %s1113_s20 = sand.u32 1, %s995_s17  }
  0x1d   : > { %s1110_s14 = scalar_select %p29_p13, %s995_s17, %s31_s11  }
  0x1e   : > { %p40_p7 = por %p39_p0, %p38_p12  ;;  %s651_s23 = sshll.u32 %s1113_s20, 5 }
  0x1f   : > { %1244 = sst [smem:[#allocation16_spill]] %s1110_s14  ;;  %s667_s24 = sshll.u32 %s999_s18, 5 }
  0x20   : > { %s199_s28 = scalar_lea.hbm %s1229_s0, %s667_s24  ;;  %s194_s29 = scalar_lea.vmem [#allocation2], %s651_s23 }
  0x21   : > { %s202_s30 = sshll.u32 %s194_s29, 4  ;;  %s200_s5 = sshll.u32 %s199_s28, 4  ;;  %s203_s30 = int_to_ptr.vmem [resolvable:$true] %s202_s30  ;;  %s201_s5 = int_to_ptr.hbm [resolvable:$true] %s200_s5 }
  0x22   : > { %p1120_p2 = pnand %p735_p5, %p40_p7  ;;  %s212_s9 = sand.u32 1, %s999_s18  }
  0x23   : > { %s654_s11 = sshll.u32 %s1113_s20, 3  ;;  %s191_s12 = scalar_lea.sflag [#allocation3], %s1113_s20 }
  0x24   : > { %s861_s6 = sshra.s32 %s201_s5, 4  ;;  %p865_p10 = pneg %p1120_p2  ;;  %s862_s6 = int_to_ptr.hbm [resolvable:$true] %s861_s6 }
  0x25   : > { %s863_s7 = scalar_lea.hbm %s862_s6, 32  ;;  %s868_s25 = scalar_lea.hbm %s1229_s0, 64 }
  0x26   : > { %p864_p9 = scmp.ne.s32.totalorder %s862_s6, %s863_s7  ;;  %p869_p0 = scmp.lt.s32.totalorder %s862_s6, %s1229_s0 }
  0x27   : > { %p870_p5 = scmp.lt.s32.totalorder %s868_s25, %s863_s7 }
  0x28   : > { %p866_p12 = pnand %p865_p10, %p864_p9 }
  0x29   : > { %p871_p7 = por %p870_p5, %p869_p0 }
  0x2a   : > { %p867_p13 = pneg %p866_p12 }
  0x2c   : > { %p872_p11 = pnand %p871_p7, %p867_p13 }
  0x2e   : > { %875 = shalt.err (!%p872_p11)
}
  0x2f   : > { %s1246_s20 = smov 8   ;;  %s1247_s29 = smov 128  }
  0x30   : > { %725 = dma.hbm_to_vmem [thread:$0]  (!%p1120_p2), %s201_s5, 512, %s203_s30, %s191_s12, %s1247_s29, %s1247_s29, %s1246_s20  }
  0x31   : > { %s655_s2 = sshll.u32 %s999_s18, 3  ;;  %s216_s14 = scalar_lea.vmem [#allocation5], %s654_s11 }
  0x32   : > { %s220_s24 = scalar_lea.hbm %s1230_s1, %s655_s2  ;;  %s224_s27 = sshll.u32 %s216_s14, 4  ;;  %s225_s27 = int_to_ptr.vmem [resolvable:$true] %s224_s27 }
  0x33   : > { %s222_s6 = sshll.u32 %s220_s24, 4  ;;  %s213_s7 = scalar_lea.sflag [#allocation6], %s212_s9  ;;  %s223_s6 = int_to_ptr.hbm [resolvable:$true] %s222_s6 }
  0x34   : > { %s891_s25 = sshra.s32 %s223_s6, 4  ;;  %s898_s12 = scalar_lea.hbm %s1230_s1, 16  ;;  %s892_s25 = int_to_ptr.hbm [resolvable:$true] %s891_s25 }
  0x35   : > { %s893_s28 = scalar_lea.hbm %s892_s25, 8  ;;  %p899_p13 = scmp.lt.s32.totalorder %s892_s25, %s1230_s1 }
  0x36   : > { %p894_p11 = scmp.ne.s32.totalorder %s892_s25, %s893_s28  ;;  %p900_p0 = scmp.lt.s32.totalorder %s898_s12, %s893_s28 }
  0x38   : > { %p896_p9 = pnand %p894_p11, %p865_p10  ;;  %p901_p5 = por %p900_p0, %p899_p13 }
  0x3a   : > { %p897_p12 = pneg %p896_p9 }
  0x3c   : > { %p902_p7 = pnand %p901_p5, %p897_p12 }
  0x3e   : > { %905 = shalt.err (!%p902_p7)
}
  0x3f   : > { %728 = dma.hbm_to_vmem [thread:$0]  (!%p1120_p2), %s223_s6, 128, %s225_s27, %s213_s7  }
  0x40   : > { %233 = sbr.rel (%p1075_p8) target bundleno = 560 (0x230), region = 36  ;;  %s1161_s14 = sand.u32 (!%p1075_p8), 1, %s991_s16  }
  0x41   : > { %s657_s9 = sshll.u32 (!%p1075_p8), %s1161_s14, 5  ;;  %s236_s11 = scalar_lea.sflag (!%p1075_p8), [#allocation3], %s1161_s14 }
  0x42   : > { %s1167_s20 = scalar_lea.vmem (!%p1075_p8), [#allocation2], %s657_s9 }
  0x45   : > { %966 = dma.done.wait (%p1062_p4), %s236_s11, 512  }
  0x46   : > { %968 = vsyncadd (%p1062_p4), %s236_s11, 4294966784  ;;  %s245_s26 = sand.u32 1, %s1053_s19   ;;  %s658_s8 = sshll.u32 %s1161_s14, 3 }
  0x47   : > { %s246_s29 = scalar_lea.sflag [#allocation6], %s245_s26  ;;  %s1175_s23 = scalar_lea.vmem [#allocation5], %s658_s8 }
  0x48   : > { %970 = dma.done.wait (%p1062_p4), %s246_s29, 128  }
  0x49   : > { %972 = vsyncadd (%p1062_p4), %s246_s29, 4294967168 }
  0x4a   : > { %974 = dma.done.wait (%p45_p1), [#allocation6], 2048  }
  0x4b   : > { %976 = vsyncadd (%p45_p1), [#allocation6], 4294965248 }
  0x4c   : > { %978 = dma.done.wait (%p45_p1), [#allocation9], 2048  }
  0x4d   : > { %980 = vsyncadd (%p45_p1), [#allocation9], 4294965248  ;;  %v320_v0 = vld [vmem:[#allocation7 + $0x78] sm:$0xff]  ;;  %v319_v1 = vld [vmem:[#allocation7 + $0x70] sm:$0xff]  ;;  %s289_s21 = scalar_lea.vmem [#allocation10], %s657_s9  ;;  %s668_s24 = sshll.u32 %s1053_s19, 5 }
  0x4e   : > { %337 = vmatpush.xpose.msra.mxu0 %v320_v0  ;;  %670 = vmatpush.xpose.msra.mxu3 %v320_v0  ;;  %v318_v2 = vld [vmem:[#allocation7 + $0x68] sm:$0xff]  ;;  %v317_v3 = vld [vmem:[#allocation7 + $0x60] sm:$0xff]  ;;  %v316_v4 = vld [vmem:[#allocation7 + $0x58] sm:$0xff]  ;;  %s527_s7 = scalar_lea.hbm %s1233_s4, %s668_s24  ;;  %s528_s25 = sshll.u32 %s289_s21, 4  ;;  %s529_s25 = int_to_ptr.vmem [resolvable:$true] %s528_s25 }
  0x4f   : > { %669 = vmatpush.xpose.msra.mxu2 %v320_v0  ;;  %v315_v5 = vld [vmem:[#allocation7 + $0x50] sm:$0xff]  ;;  %v314_v6 = vld [vmem:[#allocation7 + $0x48] sm:$0xff]  ;;  %v313_v7 = vld [vmem:[#allocation7 + $0x40] sm:$0xff]  ;;  %s530_s28 = sshll.u32 %s527_s7, 4  ;;  %s516_s19 = scalar_lea.sflag [#allocation4], %s1161_s14  ;;  %s531_s28 = int_to_ptr.hbm [resolvable:$true] %s530_s28 }
  0x50   : > { %v312_v8 = vld [vmem:[#allocation7 + $0x38] sm:$0xff]  ;;  %v311_v9 = vld [vmem:[#allocation7 + $0x30] sm:$0xff]  ;;  %v310_v10 = vld [vmem:[#allocation7 + $0x28] sm:$0xff]  ;;  %s935_s30 = sshra.s32 %s531_s28, 4  ;;  %s941_s2 = scalar_lea.hbm %s1233_s4, 64  ;;  %s936_s30 = int_to_ptr.hbm [resolvable:$true] %s935_s30 }
  0x51   : > { %v309_v11 = vld [vmem:[#allocation7 + $0x20] sm:$0xff]  ;;  %v308_v12 = vld [vmem:[#allocation7 + $0x18] sm:$0xff]  ;;  %v307_v13 = vld [vmem:[#allocation7 + $0x10] sm:$0xff]  ;;  %s937_s5 = scalar_lea.hbm %s936_s30, 32  ;;  %p942_p2 = scmp.lt.s32.totalorder %s936_s30, %s1233_s4 }
  0x52   : > { %338 = vmatpush.xpose.msra.mxu0 %v319_v1  ;;  %672 = vmatpush.xpose.msra.mxu3 %v319_v1  ;;  %v306_v14 = vld [vmem:[#allocation7 + $0x8] sm:$0xff]  ;;  %v305_v15 = vld [vmem:[#allocation7] sm:$0xff]  ;;  %v292_v16 = vld [vmem:[%s1167_s20] sm:$0xff]  ;;  %p938_p1 = scmp.ne.s32.totalorder %s936_s30, %s937_s5  ;;  %p943_p10 = scmp.lt.s32.totalorder %s941_s2, %s937_s5 }
  0x53   : > { %671 = vmatpush.xpose.msra.mxu2 %v319_v1  ;;  %v294_v17 = vld [vmem:[%s1167_s20 + $0x10] sm:$0xff]  ;;  %v293_v18 = vld [vmem:[%s1167_s20 + $0x8] sm:$0xff]  ;;  %v295_v19 = vld [vmem:[%s1167_s20 + $0x18] sm:$0xff] }
  0x54   : > { %v336_v20 = vld [vmem:[#allocation8 + $0x78] sm:$0xff]  ;;  %v335_v21 = vld [vmem:[#allocation8 + $0x70] sm:$0xff]  ;;  %v334_v22 = vld [vmem:[#allocation8 + $0x68] sm:$0xff]  ;;  %p939_p4 = pnand %p938_p1, %p1104_p3  ;;  %p944_p11 = por %p943_p10, %p942_p2 }
  0x55   : > { %414 = vmatpush.msra.mxu1 %v336_v20  ;;  %v296_v23 = vld [vmem:[%s1175_s23] sm:$0xff]  ;;  %v333_v24 = vld [vmem:[#allocation8 + $0x60] sm:$0xff]  ;;  %v330_v29 = vld [vmem:[#allocation8 + $0x48] sm:$0xff] }
  0x56   : > { %339 = vmatpush.xpose.msra.mxu0 %v318_v2  ;;  %674 = vmatpush.xpose.msra.mxu3 %v318_v2  ;;  %v297_v25 = vunpack.c.0.s8 %v296_v23  ;;  %v332_v26 = vld [vmem:[#allocation8 + $0x58] sm:$0xff]  ;;  %v331_v27 = vld [vmem:[#allocation8 + $0x50] sm:$0xff]  ;;  %v299_v30 = vunpack.c.2.s8 %v296_v23  ;;  %v329_v31 = vld [vmem:[#allocation8 + $0x40] sm:$0xff]  ;;  %v298_v32 = vunpack.c.1.s8 %v296_v23  ;;  %v300_v38 = vunpack.c.3.s8 %v296_v23  ;;  %p940_p8 = pneg %p939_p4 }
  0x57   : > { %673 = vmatpush.xpose.msra.mxu2 %v318_v2  ;;  %415 = vmatpush.msra.mxu1 %v335_v21  ;;  %v328_v33 = vld [vmem:[#allocation8 + $0x38] sm:$0xff]  ;;  %v327_v46 = vld [vmem:[#allocation8 + $0x30] sm:$0xff]  ;;  %v326_v47 = vld [vmem:[#allocation8 + $0x28] sm:$0xff] }
  0x58   : > { %v301_v28 = vcvt.s32.f32 %v297_v25  ;;  %v303_v35 = vcvt.s32.f32 %v299_v30  ;;  %v302_v37 = vcvt.s32.f32 %v298_v32  ;;  %v304_v43 = vcvt.s32.f32 %v300_v38  ;;  %v325_v48 = vld [vmem:[#allocation8 + $0x20] sm:$0xff]  ;;  %v324_v49 = vld [vmem:[#allocation8 + $0x18] sm:$0xff]  ;;  %v323_v50 = vld [vmem:[#allocation8 + $0x10] sm:$0xff]  ;;  %p945_p9 = pnand %p944_p11, %p940_p8 }
  0x59   : > { %416 = vmatpush.msra.mxu1 %v334_v22  ;;  %v322_v51 = vld [vmem:[#allocation8 + $0x8] sm:$0xff]  ;;  %v321_v52 = vld [vmem:[#allocation8] sm:$0xff] }
  0x5a   : > { %340 = vmatpush.xpose.msra.mxu0 %v317_v3  ;;  %676 = vmatpush.xpose.msra.mxu3 %v317_v3  ;;  %vm366_vm0 = vcmp.gt.f32.partialorder %v301_v28, 0.0  ;;  %vm368_vm1 = vcmp.gt.f32.partialorder %v303_v35, 0.0  ;;  %vm367_vm2 = vcmp.gt.f32.partialorder %v302_v37, 0.0  ;;  %vm369_vm3 = vcmp.gt.f32.partialorder %v304_v43, 0.0 }
  0x5b   : > { %675 = vmatpush.xpose.msra.mxu2 %v317_v3  ;;  %417 = vmatpush.msra.mxu1 %v333_v24 }
  0x5d   : > { %418 = vmatpush.msra.mxu1 %v332_v26 }
  0x5e   : > { %341 = vmatpush.xpose.msra.mxu0 %v316_v4  ;;  %678 = vmatpush.xpose.msra.mxu3 %v316_v4 }
  0x5f   : > { %677 = vmatpush.xpose.msra.mxu2 %v316_v4  ;;  %419 = vmatpush.msra.mxu1 %v331_v27 }
  0x61   : > { %420 = vmatpush.msra.mxu1 %v330_v29 }
  0x62   : > { %342 = vmatpush.xpose.msra.mxu0 %v315_v5  ;;  %680 = vmatpush.xpose.msra.mxu3 %v315_v5 }
  0x63   : > { %679 = vmatpush.xpose.msra.mxu2 %v315_v5  ;;  %421 = vmatpush.msra.mxu1 %v329_v31 }
  0x65   : > { %422 = vmatpush.msra.mxu1 %v328_v33 }
  0x66   : > { %343 = vmatpush.xpose.msra.mxu0 %v314_v6  ;;  %682 = vmatpush.xpose.msra.mxu3 %v314_v6 }
  0x67   : > { %681 = vmatpush.xpose.msra.mxu2 %v314_v6  ;;  %423 = vmatpush.msra.mxu1 %v327_v46 }
  0x69   : > { %424 = vmatpush.msra.mxu1 %v326_v47 }
  0x6a   : > { %344 = vmatpush.xpose.msra.mxu0 %v313_v7  ;;  %684 = vmatpush.xpose.msra.mxu3 %v313_v7 }
  0x6b   : > { %683 = vmatpush.xpose.msra.mxu2 %v313_v7  ;;  %425 = vmatpush.msra.mxu1 %v325_v48 }
  0x6d   : > { %426 = vmatpush.msra.mxu1 %v324_v49 }
  0x6e   : > { %345 = vmatpush.xpose.msra.mxu0 %v312_v8  ;;  %686 = vmatpush.xpose.msra.mxu3 %v312_v8 }
  0x6f   : > { %685 = vmatpush.xpose.msra.mxu2 %v312_v8  ;;  %427 = vmatpush.msra.mxu1 %v323_v50 }
  0x71   : > { %428 = vmatpush.msra.mxu1 %v322_v51 }
  0x72   : > { %346 = vmatpush.xpose.msra.mxu0 %v311_v9  ;;  %688 = vmatpush.xpose.msra.mxu3 %v311_v9 }
  0x73   : > { %687 = vmatpush.xpose.msra.mxu2 %v311_v9  ;;  %429 = vmatpush.msra.mxu1 %v321_v52 }
  0x76   : > { %347 = vmatpush.xpose.msra.mxu0 %v310_v10  ;;  %690 = vmatpush.xpose.msra.mxu3 %v310_v10 }
  0x77   : > { %689 = vmatpush.xpose.msra.mxu2 %v310_v10 }
  0x7a   : > { %348 = vmatpush.xpose.msra.mxu0 %v309_v11  ;;  %692 = vmatpush.xpose.msra.mxu3 %v309_v11 }
  0x7b   : > { %691 = vmatpush.xpose.msra.mxu2 %v309_v11 }
  0x7e   : > { %349 = vmatpush.xpose.msra.mxu0 %v308_v12  ;;  %694 = vmatpush.xpose.msra.mxu3 %v308_v12 }
  0x7f   : > { %693 = vmatpush.xpose.msra.mxu2 %v308_v12 }
  0x82   : > { %350 = vmatpush.xpose.msra.mxu0 %v307_v13  ;;  %696 = vmatpush.xpose.msra.mxu3 %v307_v13 }
  0x83   : > { %695 = vmatpush.xpose.msra.mxu2 %v307_v13 }
  0x86   : > { %351 = vmatpush.xpose.msra.mxu0 %v306_v14  ;;  %698 = vmatpush.xpose.msra.mxu3 %v306_v14 }
  0x87   : > { %697 = vmatpush.xpose.msra.mxu2 %v306_v14 }
  0x8a   : > { %352 = vmatpush.xpose.msra.mxu0 %v305_v15  ;;  %700 = vmatpush.xpose.msra.mxu3 %v305_v15 }
  0x8b   : > { %699 = vmatpush.xpose.msra.mxu2 %v305_v15 }
  0x8d   : > { %353 = vmatmul.f32.vlgmr.msra.gmra.mxu0 %v292_v16  ;;  %359 = vmatmul.f32.vlgmr.msra.gmra.mxu3 %v294_v17 }
  0x8e   : > { %356 = vmatmul.f32.vlgmr.msra.gmra.mxu2 %v293_v18 }
  0x95   : > { %362 = vmatmul.f32.gmra.mxu3 %v295_v19 }
 0x10a   : > { %v354_v34 = vpop.f32.mrf.mxu0 }
 0x10b   : > { %v370_v36 = vsel %vm366_vm0, %v354_v34, -1e+30 }
 0x10c   : > { %374 = vmax.xlane.f32.xlu0 %v370_v36 }
 0x110   : > { %v360_v39 = vpop.f32.mrf.mxu3 }
 0x111   : > { %v372_v40 = vsel %vm368_vm1, %v360_v39, -1e+30  ;;  %v357_v41 = vpop.f32.mrf.mxu2 }
 0x112   : > { %378 = vmax.xlane.f32.xlu1 %v372_v40  ;;  %v371_v42 = vsel %vm367_vm2, %v357_v41, -1e+30 }
 0x114   : > { %376 = vmax.xlane.f32.xlu0 %v371_v42 }
 0x118   : > { %v363_v44 = vpop.f32.mrf.mxu3 }
 0x119   : > { %v373_v45 = vsel %vm369_vm3, %v363_v44, -1e+30 }
 0x11a   : > { %380 = vmax.xlane.f32.xlu1 %v373_v45 }
 0x17f   : > { %v375_v53 = vpop.xlane.xlu0 %374 }
 0x180   : > { %v382_v54 = vsub.f32 %v370_v36, %v375_v53 }
 0x182   : > { %v386_v55 = vmul.f32 1.442695, %v382_v54 }
 0x184   : > { %777 = vpow2.f32 %v386_v55 }
 0x185   : > { %v379_v56 = vpop.xlane.xlu1 %378 }
 0x186   : > { %v384_v57 = vsub.f32 %v372_v40, %v379_v56 }
 0x187   : > { %v377_v58 = vpop.xlane.xlu0 %376 }
 0x188   : > { %v390_v59 = vmul.f32 1.442695, %v384_v57  ;;  %v383_v60 = vsub.f32 %v371_v42, %v377_v58 }
 0x18a   : > { %v778_v61 = vpop.eup %777  ;;  %779 = vpow2.f32 %v390_v59  ;;  %v388_v62 = vmul.f32 1.442695, %v383_v60 }
 0x18b   : > { %v394_v63 = vmul.f32 %v778_v61, %v301_v28 }
 0x18c   : > { %781 = vpow2.f32 %v388_v62 }
 0x18d   : > { %v381_v0 = vpop.xlane.xlu1 %380  ;;  %398 = vadd.xlane.f32.xlu2 %v394_v63  ;;  %430 = vmatmul.f32.vlgmr.msra.gmra.mxu1 %v394_v63 }
 0x18e   : > { %v385_v1 = vsub.f32 %v373_v45, %v381_v0 }
 0x190   : > { %v780_v2 = vpop.eup %779  ;;  %v392_v3 = vmul.f32 1.442695, %v385_v1 }
 0x191   : > { %v396_v4 = vmul.f32 %v780_v2, %v303_v35 }
 0x192   : > { %v782_v5 = vpop.eup %781  ;;  %783 = vpow2.f32 %v392_v3 }
 0x193   : > { %402 = vadd.xlane.f32.xlu0 %v396_v4  ;;  %v395_v6 = vmul.f32 %v782_v5, %v302_v37 }
 0x195   : > { %400 = vadd.xlane.f32.xlu2 %v395_v6  ;;  %433 = vmatmul.f32.gmra.mxu1 %v395_v6 }
 0x198   : > { %v784_v7 = vpop.eup %783 }
 0x199   : > { %v397_v8 = vmul.f32 %v784_v7, %v304_v43 }
 0x19b   : > { %404 = vadd.xlane.f32.xlu1 %v397_v8 }
 0x19d   : > { %436 = vmatmul.f32.gmra.mxu1 %v396_v4 }
 0x1a5   : > { %439 = vmatmul.f32.gmra.mxu1 %v397_v8 }
 0x200   : > { %v399_v9 = vpop.xlane.xlu2 %398 }
 0x201   : > { %vm406_vm4 = vcmp.gt.f32.partialorder %v399_v9, 0.0 }
 0x202   : > { %v410_v10 = vsel %vm406_vm4, %v399_v9, 1.0 }
 0x203   : > { %785 = vrcp.f32 %v410_v10  ;;  %v454_v19 = vand.u32 2147483648, %v410_v10  ;;  %v452_v21 = vand.u32 2147483647, %v410_v10  ;;  %vm448_vm9 = vweird.f32 %v410_v10 }
 0x205   : > { %v455_v28 = vor.u32 1.1754944e-38, %v454_v19  ;;  %vm453_vm11 = vcmp.eq.f32.partialorder %v452_v21, 8.507059e+37 }
 0x206   : > { %v403_v11 = vpop.xlane.xlu0 %402 }
 0x207   : > { %vm408_vm5 = vcmp.gt.f32.partialorder %v403_v11, 0.0 }
 0x208   : > { %v412_v12 = vsel %vm408_vm5, %v403_v11, 1.0  ;;  %v401_v13 = vpop.xlane.xlu2 %400 }
 0x209   : > { %v786_v14 = vpop.eup %785  ;;  %787 = vrcp.f32 %v412_v12  ;;  %vm407_vm6 = vcmp.gt.f32.partialorder %v401_v13, 0.0  ;;  %v482_v34 = vand.u32 2147483647, %v412_v12  ;;  %v484_v35 = vand.u32 2147483648, %v412_v12 }
 0x20a   : > { %v444_v15 = vmul.f32 %v786_v14, %v410_v10  ;;  %v411_v16 = vsel %vm407_vm6, %v401_v13, 1.0  ;;  %v431_v17 = vpop.f32.mrf.mxu1  ;;  %vm449_vm7 = vweird.f32 %v786_v14  ;;  %vm478_vm13 = vweird.f32 %v412_v12 }
 0x20b   : > { %789 = vrcp.f32 %v411_v16  ;;  %vm450_vm10 = vmor %vm448_vm9, %vm449_vm7  ;;  %v467_v39 = vand.u32 2147483647, %v411_v16  ;;  %v469_v40 = vand.u32 2147483648, %v411_v16  ;;  %vm463_vm15 = vweird.f32 %v411_v16 }
 0x20c   : > { %v445_v18 = vsub.f32 1.0, %v444_v15  ;;  %v485_v44 = vor.u32 1.1754944e-38, %v484_v35  ;;  %vm483_vm1 = vcmp.eq.f32.partialorder %v482_v34, 8.507059e+37 }
 0x20d   : > { %v470_v48 = vor.u32 1.1754944e-38, %v469_v40  ;;  %vm468_vm3 = vcmp.eq.f32.partialorder %v467_v39, 8.507059e+37 }
 0x20e   : > { %v446_v20 = vmul.f32 %v786_v14, %v445_v18  ;;  %v405_v22 = vpop.xlane.xlu1 %404 }
 0x20f   : > { %v788_v23 = vpop.eup %787  ;;  %vm409_vm8 = vcmp.gt.f32.partialorder %v405_v22, 0.0 }
 0x210   : > { %v474_v24 = vmul.f32 %v788_v23, %v412_v12  ;;  %v447_v25 = vadd.f32 %v786_v14, %v446_v20  ;;  %v413_v26 = vsel %vm409_vm8, %v405_v22, 1.0  ;;  %vm479_vm12 = vweird.f32 %v788_v23 }
 0x211   : > { %v790_v27 = vpop.eup %789  ;;  %791 = vrcp.f32 %v413_v26  ;;  %vm480_vm0 = vmor %vm478_vm13, %vm479_vm12  ;;  %v499_v55 = vand.u32 2147483648, %v413_v26  ;;  %v497_v59 = vand.u32 2147483647, %v413_v26  ;;  %vm493_vm5 = vweird.f32 %v413_v26 }
 0x212   : > { %v475_v29 = vsub.f32 1.0, %v474_v24  ;;  %v459_v30 = vmul.f32 %v790_v27, %v411_v16  ;;  %v451_v31 = vsel %vm450_vm10, %v786_v14, %v447_v25  ;;  %v434_v32 = vpop.f32.mrf.mxu1  ;;  %vm464_vm14 = vweird.f32 %v790_v27 }
 0x213   : > { %v456_v33 = vsel %vm453_vm11, %v455_v28, %v451_v31  ;;  %vm465_vm2 = vmor %vm463_vm15, %vm464_vm14  ;;  %v500_v61 = vor.u32 1.1754944e-38, %v499_v55  ;;  %vm498_vm7 = vcmp.eq.f32.partialorder %v497_v59, 8.507059e+37 }
 0x214   : > { %v476_v36 = vmul.f32 %v788_v23, %v475_v29  ;;  %v460_v37 = vsub.f32 1.0, %v459_v30  ;;  %v503_v38 = vmul.f32 %v456_v33, %v431_v17 }
 0x216   : > { %v461_v41 = vmul.f32 %v790_v27, %v460_v37  ;;  %793 = vtanh.f32 %v503_v38  ;;  %v477_v42 = vadd.f32 %v788_v23, %v476_v36 }
 0x217   : > { %v792_v43 = vpop.eup %791 }
 0x218   : > { %v489_v45 = vmul.f32 %v792_v43, %v413_v26  ;;  %v462_v46 = vadd.f32 %v790_v27, %v461_v41  ;;  %v481_v47 = vsel %vm480_vm0, %v788_v23, %v477_v42  ;;  %vm494_vm4 = vweird.f32 %v792_v43 }
 0x219   : > { %v486_v49 = vsel %vm483_vm1, %v485_v44, %v481_v47  ;;  %vm495_vm6 = vmor %vm493_vm5, %vm494_vm4 }
 0x21a   : > { %v490_v50 = vsub.f32 1.0, %v489_v45  ;;  %v466_v51 = vsel %vm465_vm2, %v790_v27, %v462_v46  ;;  %v437_v52 = vpop.f32.mrf.mxu1 }
 0x21b   : > { %v471_v53 = vsel %vm468_vm3, %v470_v48, %v466_v51  ;;  %v505_v54 = vmul.f32 %v486_v49, %v437_v52 }
 0x21c   : > { %v794_v56 = vpop.eup %793  ;;  %v491_v57 = vmul.f32 %v792_v43, %v490_v50  ;;  %v504_v58 = vmul.f32 %v471_v53, %v434_v32 }
 0x21d   : > { %511 = vst [vmem:[%s289_s21] sm:$0xff] %v794_v56  ;;  %795 = vtanh.f32 %v505_v54 }
 0x21e   : > { %797 = vtanh.f32 %v504_v58  ;;  %v492_v60 = vadd.f32 %v792_v43, %v491_v57 }
 0x220   : > { %v496_v62 = vsel %vm495_vm6, %v792_v43, %v492_v60 }
 0x221   : > { %v501_v63 = vsel %vm498_vm7, %v500_v61, %v496_v62 }
 0x222   : > { %v440_v0 = vpop.f32.mrf.mxu1 }
 0x223   : > { %v796_v1 = vpop.eup %795  ;;  %v506_v2 = vmul.f32 %v501_v63, %v440_v0 }
 0x224   : > { %v798_v3 = vpop.eup %797  ;;  %513 = vst [vmem:[%s289_s21 + $0x10] sm:$0xff] %v796_v1 }
 0x225   : > { %512 = vst [vmem:[%s289_s21 + $0x8] sm:$0xff] %v798_v3  ;;  %799 = vtanh.f32 %v506_v2 }
 0x22b   : > { %v800_v4 = vpop.eup %799 }
 0x22c   : > { %514 = vst [vmem:[%s289_s21 + $0x18] sm:$0xff] %v800_v4 }
 0x22d   : > { %948 = shalt.err (!%p945_p9)
}
 0x22e   : > { %s1005_s14 = smov 128   ;;  %s1006_s20 = smov 8  }
 0x22f   : > { %713 = dma.vmem_to_hbm [thread:$0]  (%p1104_p3), %s529_s25, 512, %s531_s28, %s516_s19, %s1005_s14, %s1005_s14, %s1006_s20  }
 0x230 PF: > { %s545_s26 = sand.u32 1, %s987_s15   ;;  %p1248_p12 = scmp.ge.s32.totalorder %s999_s18, 2 }
 0x231   : > { %s546_s8 = scalar_lea.sflag [#allocation4], %s545_s26 }
 0x232   : > { %p730_p13 = pnand %p1248_p12, %p1067_p6 }
 0x234   : > { %p731_p0 = pneg %p730_p13 }
 0x236   : > { %982 = dma.done.wait (%p731_p0), %s546_s8, 512  }
 0x237   : > { %984 = vsyncadd (%p731_p0), %s546_s8, 4294966784  ;;  %s1249_s29 = sld [smem:[#allocation16_spill]]  ;;  %p21_p5 = scmp.ge.s32.totalorder %s1094_s10, 4  }
 0x238   : > { %s1250_s15 = smov %s991_s16  ;;  %s1251_s16 = smov %s995_s17 }
 0x239   : > { %s1253_s18 = smov %s1094_s10  ;;  %23 = sbr.rel (!%p21_p5) target bundleno = 11 (0xb), region = 102 }
 0x23d   : > { %s1252_s17 = smov %s1249_s29 }
 0x23e   :  { %552 = vsyncpa [#allocation3], 1 }
 0x23f   :  { %554 = vsyncpa [#allocation3 + $0x1], 1 }
 0x240   :  { %555 = vsyncpa [#allocation6], 1 }
 0x241   :  { %557 = vsyncpa [#allocation6 + $0x1], 1 }
 0x242   :  { %558 = vsyncpa [#allocation9], 1 }
 0x243   :  { %559 = vsyncpa [#allocation4], 1 }
 0x244   :  { %561 = vsyncpa [#allocation4 + $0x1], 1 }

</bundles_post_ra>
